<compile_context>
chip_gen: v5e
topology: v5e:2x2
jax: 0.10.0
libtpu: 0.0.40
codegen_flags: <defaults>
</compile_context>

<pallas_src>
import jax
import jax.numpy as jnp
from jax import lax
from jax.experimental import pallas as pl
from jax.experimental.pallas import tpu as pltpu

LN_EPS = 1e-5  # PyTorch nn.LayerNorm default


def _cdiv(a, b):
    return (a + b - 1) // b


def _round_up(a, m):
    return _cdiv(a, m) * m


# ---------------------------------------------------------------------------
# Kernel
# ---------------------------------------------------------------------------
def _metric_head_kernel(x_ref, gamma_ref, beta_ref, w_ref, b_ref, o_ref, y_ref):
    # Grid = (batch tiles, class tiles); class axis is innermost/"arbitrary".
    # LayerNorm is computed once per batch tile and cached in the VMEM scratch
    # y_ref (matmul operand dtype), then reused for every class tile.
    @pl.when(pl.program_id(1) == 0)
    def _():
        x = x_ref[...].astype(jnp.float32)
        mean = jnp.mean(x, axis=-1, keepdims=True)
        centered = x - mean
        var = jnp.mean(centered * centered, axis=-1, keepdims=True)
        y = centered * lax.rsqrt(var + LN_EPS)
        y = y * gamma_ref[...] + beta_ref[...]
        y_ref[...] = y.astype(y_ref.dtype)

    # Linear: bf16 x bf16 -> f32 accumulation on the MXU.
    logits = jnp.dot(y_ref[...], w_ref[...], preferred_element_type=jnp.float32)
    o_ref[...] = (logits + b_ref[...]).astype(o_ref.dtype)


# ---------------------------------------------------------------------------
# One-time parameter prep (hoisted out of the per-call forward)
# ---------------------------------------------------------------------------
def prepare_metric_head_params(gamma, beta, weight, bias, *, weight_dtype=jnp.bfloat16):
    """weight is (dim, num_classes), i.e. torch nn.Linear weight transposed.

    weight_dtype=jnp.float32 keeps exact torch parity at 2x the weight VMEM.
    """
    D = gamma.shape[0]
    C = weight.shape[1]
    return {
        "gamma": gamma.reshape(1, D).astype(jnp.float32),
        "beta": beta.reshape(1, D).astype(jnp.float32),
        "weight": weight.astype(weight_dtype),
        "bias": bias.reshape(1, C).astype(jnp.float32),
    }


# ---------------------------------------------------------------------------
# Tiling / VMEM budgeting
# ---------------------------------------------------------------------------
def _vmem_budget_bytes():
    # ~3/4 of the physical per-core VMEM: ~96 MiB on v5e/v6e (128 MiB parts),
    # ~48 MiB on v7x (64 MiB part).  Leaves headroom for compiler scratch.
    try:
        cap = pltpu.get_tpu_info().vmem_capacity_bytes
        return int(cap * 3 // 4)
    except Exception:
        return 48 * 1024 * 1024  # conservative fallback, safe on every part


def _choose_tiles(B, D, C, x_bytes, w_bytes, out_bytes, budget, tb_target):
    sub = {4: 8, 2: 16, 1: 32}.get(x_bytes, 8)  # sublane granularity for x
    cp = _round_up(C, 128)                      # lane-dense class width

    # Class tile: keep the whole class dim resident if the (double-buffered)
    # weight fits in half the budget; otherwise tile in multiples of 256
    # (full MXU N dim on v6e/v7x).
    if 2 * D * cp * w_bytes <= budget // 2:
        tn = cp
    else:
        tn = 512
        while tn > 256 and 2 * D * tn * w_bytes > budget // 2:
            tn //= 2
        tn = min(tn, cp)

    # Batch tile: target tb_target rows (~2-4 MiB/step of x at typical D),
    # clipped to what fits the remaining VMEM budget and to B.
    per_row = 2 * D * x_bytes + 2 * tn * out_bytes + D * w_bytes + 2 * D * 4
    rem = budget - 2 * D * tn * w_bytes - (2 * D + tn) * 4 * 2
    tb_max = max(sub, (rem // per_row) // sub * sub)
    tb = max(sub, min(_round_up(tb_target, sub), tb_max, _round_up(B, sub)))

    # Give the "parallel" batch axis at least two steps so v7x's two
    # TensorCores can both contribute (negligible overhead on 1-TC parts).
    if B > sub and tb >= _round_up(B, sub):
        tb = _round_up(_cdiv(B, 2), sub)
    return tb, tn


def _build_call(B, D, C, tb, tn, w_dtype, out_dtype, budget, single_buffer_invariants):
    nb = _cdiv(B, tb)
    nc = _cdiv(C, tn)

    inv_kw = {"pipeline_mode": pl.Buffered(1)} if single_buffer_invariants else {}
    # weight / bias are grid-invariant (never re-fetched) only when the whole
    # class dim is one tile; otherwise they stream and want double buffering.
    w_kw = inv_kw if nc == 1 else {}

    grid_spec = pltpu.PrefetchScalarGridSpec(
        num_scalar_prefetch=0,
        grid=(nb, nc),
        in_specs=[
            pl.BlockSpec((tb, D), lambda i, j: (i, 0)),            # x tile
            pl.BlockSpec((1, D), lambda i, j: (0, 0), **inv_kw),   # gamma (f32)
            pl.BlockSpec((1, D), lambda i, j: (0, 0), **inv_kw),   # beta  (f32)
            pl.BlockSpec((D, tn), lambda i, j: (0, j), **w_kw),    # weight
            pl.BlockSpec((1, tn), lambda i, j: (0, j), **w_kw),    # bias  (f32)
        ],
        out_specs=pl.BlockSpec((tb, tn), lambda i, j: (i, j)),
        scratch_shapes=[pltpu.VMEM((tb, D), w_dtype)],  # cached LN output
    )
    return pl.pallas_call(
        _metric_head_kernel,
        out_shape=jax.ShapeDtypeStruct((B, C), out_dtype),
        grid_spec=grid_spec,
        compiler_params=pltpu.CompilerParams(
            dimension_semantics=("parallel", "arbitrary"),
            vmem_limit_bytes=budget,
        ),
    )


def metric_head_forward(x, params, *, tb=512, out_dtype=None):
    """Forward of metric_head.mlp_head: LayerNorm(dim) -> Linear(dim, C).

    x: (B, D); params: output of prepare_metric_head_params().  Returns (B, C).
    No per-call padding / slicing: ragged last blocks are handled by Pallas.
    """
    B, D = x.shape
    gamma2, beta2 = params["gamma"], params["beta"]
    w, b2 = params["weight"], params["bias"]
    C = w.shape[1]
    out_dtype = x.dtype if out_dtype is None else out_dtype

    budget = _vmem_budget_bytes()
    tb_eff, tn = _choose_tiles(
        B, D, C,
        jnp.dtype(x.dtype).itemsize,
        jnp.dtype(w.dtype).itemsize,
        jnp.dtype(out_dtype).itemsize,
        budget, tb)

    args = (x, gamma2, beta2, w, b2)
    try:
        return _build_call(B, D, C, tb_eff, tn, w.dtype, out_dtype, budget,
                           single_buffer_invariants=True)(*args)
    except Exception:
        # Fallback if this Pallas build rejects pl.Buffered(1) on invariant
        # operands (the optimization is VMEM-only; semantics are identical).
        return _build_call(B, D, C, tb_eff, tn, w.dtype, out_dtype, budget,
                           single_buffer_invariants=False)(*args)


# ---------------------------------------------------------------------------
# Pure-JAX reference
# ---------------------------------------------------------------------------
def metric_head_forward_ref(x, gamma, beta, weight, bias):
    x32 = x.astype(jnp.float32)
    mean = jnp.mean(x32, axis=-1, keepdims=True)
    var = jnp.mean((x32 - mean) ** 2, axis=-1, keepdims=True)
    x_hat = (x32 - mean) / jnp.sqrt(var + LN_EPS)
    y = x_hat * gamma + beta
    return (y @ weight.astype(jnp.float32) + bias).astype(x.dtype)


if __name__ == "__main__":
    # Small shapes consistent with the module (dim -> hidden, num_classes).
    # C deliberately not a multiple of 128 and B small, to exercise the
    # ragged-last-block paths (no wrapper pad/slice).
    B, D, C = 16, 256, 100

    key = jax.random.PRNGKey(0)
    kx, kg, kb, kw, kbi = jax.random.split(key, 5)

    x = jax.random.normal(kx, (B, D), dtype=jnp.float32)

    # Synthetic parameters matching the module's shapes:
    # LayerNorm(dim) -> gamma/beta (D,); Linear(dim, num_classes) -> W (D,C), b (C,).
    gamma = 1.0 + 0.01 * jax.random.normal(kg, (D,), dtype=jnp.float32)
    beta = 0.01 * jax.random.normal(kb, (D,), dtype=jnp.float32)
    weight = jax.random.normal(kw, (D, C), dtype=jnp.float32) * (1.0 / jnp.sqrt(D))
    bias = 0.01 * jax.random.normal(kbi, (C,), dtype=jnp.float32)

    # One-time parameter prep (hoisted out of the forward).
    params = prepare_metric_head_params(gamma, beta, weight, bias)

    out = metric_head_forward(x, params)
    out = jax.block_until_ready(out)

    ref = metric_head_forward_ref(x, gamma, beta, weight, bias)
    assert out.shape == (B, C)
    # bf16 MXU operands with f32 accumulation -> slightly looser tolerance.
    assert jnp.allclose(out, ref, atol=3e-2, rtol=3e-2), "mismatch vs reference"

    print("KERNEL_OK")
</pallas_src>

<mosaic_0001>
module attributes {stable_mosaic.version = 11 : i64} {
  func.func @_metric_head_kernel(%arg0: i32, %arg1: i32, %arg2: memref<8x256xf32, #tpu.memory_space<vmem>>, %arg3: memref<1x256xf32, #tpu.memory_space<vmem>>, %arg4: memref<1x256xf32, #tpu.memory_space<vmem>>, %arg5: memref<256x128xbf16, #tpu.memory_space<vmem>>, %arg6: memref<1x128xf32, #tpu.memory_space<vmem>>, %arg7: memref<8x128xf32, #tpu.memory_space<vmem>>, %arg8: memref<8x256xbf16, #tpu.memory_space<vmem>>) attributes {dimension_semantics = [#tpu.dimension_semantics<parallel>, #tpu.dimension_semantics<arbitrary>], iteration_bounds = array<i64: 2, 1>, scalar_prefetch = 0 : i64, scratch_operands = 1 : i64, tpu.core_type = #tpu.core_type<tc>, window_params = [{transform_indices = @transform_0, window_bounds = array<i64: 8, 256>}, {pipeline_mode = #tpu.pipeline_mode<synchronous>, transform_indices = @transform_1, window_bounds = array<i64: 1, 256>}, {pipeline_mode = #tpu.pipeline_mode<synchronous>, transform_indices = @transform_2, window_bounds = array<i64: 1, 256>}, {pipeline_mode = #tpu.pipeline_mode<synchronous>, transform_indices = @transform_3, window_bounds = array<i64: 256, 128>}, {pipeline_mode = #tpu.pipeline_mode<synchronous>, transform_indices = @transform_4, window_bounds = array<i64: 1, 128>}, {transform_indices = @transform_5, window_bounds = array<i64: 8, 128>}]} {
    %c0_i32 = arith.constant 0 : i32
    %0 = arith.cmpi eq, %arg1, %c0_i32 : i32
    %1 = arith.extui %0 : i1 to i32
    %c0_i32_0 = arith.constant 0 : i32
    %2 = arith.cmpi ne, %1, %c0_i32_0 : i32
    scf.if %2 {
      %c0_8 = arith.constant 0 : index
      %c0_9 = arith.constant 0 : index
      %10 = vector.load %arg2[%c0_8, %c0_9] : memref<8x256xf32, #tpu.memory_space<vmem>>, vector<8x256xf32>
      %cst_10 = arith.constant dense<0.000000e+00> : vector<8xf32>
      %11 = vector.multi_reduction <add>, %10, %cst_10 [1] : vector<8x256xf32> to vector<8xf32>
      %12 = vector.shape_cast %11 : vector<8xf32> to vector<8x1xf32>
      %cst_11 = arith.constant 2.560000e+02 : f32
      %13 = vector.broadcast %cst_11 : f32 to vector<8x1xf32>
      %14 = arith.divf %12, %13 : vector<8x1xf32>
      %15 = vector.broadcast %14 : vector<8x1xf32> to vector<8x256xf32>
      %16 = arith.subf %10, %15 : vector<8x256xf32>
      %17 = arith.mulf %16, %16 : vector<8x256xf32>
      %cst_12 = arith.constant dense<0.000000e+00> : vector<8xf32>
      %18 = vector.multi_reduction <add>, %17, %cst_12 [1] : vector<8x256xf32> to vector<8xf32>
      %19 = vector.shape_cast %18 : vector<8xf32> to vector<8x1xf32>
      %cst_13 = arith.constant 2.560000e+02 : f32
      %20 = vector.broadcast %cst_13 : f32 to vector<8x1xf32>
      %21 = arith.divf %19, %20 : vector<8x1xf32>
      %cst_14 = arith.constant 9.99999974E-6 : f32
      %22 = vector.broadcast %cst_14 : f32 to vector<8x1xf32>
      %23 = arith.addf %21, %22 : vector<8x1xf32>
      %24 = math.rsqrt %23 : vector<8x1xf32>
      %25 = vector.broadcast %24 : vector<8x1xf32> to vector<8x256xf32>
      %26 = arith.mulf %16, %25 : vector<8x256xf32>
      %c0_15 = arith.constant 0 : index
      %c0_16 = arith.constant 0 : index
      %27 = vector.load %arg3[%c0_15, %c0_16] : memref<1x256xf32, #tpu.memory_space<vmem>>, vector<1x256xf32>
      %28 = vector.broadcast %27 : vector<1x256xf32> to vector<8x256xf32>
      %29 = arith.mulf %26, %28 : vector<8x256xf32>
      %c0_17 = arith.constant 0 : index
      %c0_18 = arith.constant 0 : index
      %30 = vector.load %arg4[%c0_17, %c0_18] : memref<1x256xf32, #tpu.memory_space<vmem>>, vector<1x256xf32>
      %31 = vector.broadcast %30 : vector<1x256xf32> to vector<8x256xf32>
      %32 = arith.addf %29, %31 : vector<8x256xf32>
      %33 = arith.truncf %32 : vector<8x256xf32> to vector<8x256xbf16>
      %c0_19 = arith.constant 0 : index
      %c0_20 = arith.constant 0 : index
      %34 = vector.load %arg8[%c0_19, %c0_20] : memref<8x256xbf16, #tpu.memory_space<vmem>>, vector<8x256xbf16>
      tpu.vector_store %arg8[%c0_19, %c0_20], %33 {strides = array<i32>} : memref<8x256xbf16, #tpu.memory_space<vmem>>, vector<8x256xbf16>,
    } else {
    }
    %c0 = arith.constant 0 : index
    %c0_1 = arith.constant 0 : index
    %3 = vector.load %arg8[%c0, %c0_1] : memref<8x256xbf16, #tpu.memory_space<vmem>>, vector<8x256xbf16>
    %c0_2 = arith.constant 0 : index
    %c0_3 = arith.constant 0 : index
    %4 = vector.load %arg5[%c0_2, %c0_3] : memref<256x128xbf16, #tpu.memory_space<vmem>>, vector<256x128xbf16>
    %cst = arith.constant dense<0.000000e+00> : vector<8x128xf32>
    %5 = tpu.matmul %3, %4, %cst {dimension_numbers = #tpu.dot_dimension_numbers<[1], [0], [0], [1], [0, 0, 1, 1], [], []>} : vector<8x256xbf16>, vector<256x128xbf16>, vector<8x128xf32> -> vector<8x128xf32>
    %c0_4 = arith.constant 0 : index
    %c0_5 = arith.constant 0 : index
    %6 = vector.load %arg6[%c0_4, %c0_5] : memref<1x128xf32, #tpu.memory_space<vmem>>, vector<1x128xf32>
    %7 = vector.broadcast %6 : vector<1x128xf32> to vector<8x128xf32>
    %8 = arith.addf %5, %7 : vector<8x128xf32>
    %c0_6 = arith.constant 0 : index
    %c0_7 = arith.constant 0 : index
    %9 = vector.load %arg7[%c0_6, %c0_7] : memref<8x128xf32, #tpu.memory_space<vmem>>, vector<8x128xf32>
    tpu.vector_store %arg7[%c0_6, %c0_7], %8 {strides = array<i32>} : memref<8x128xf32, #tpu.memory_space<vmem>>, vector<8x128xf32>,
    return
  }
  func.func @transform_0(%arg0: i32, %arg1: i32) -> (i32, i32) {
    %c0_i32 = arith.constant 0 : i32
    %c0_i32_0 = arith.constant 0 : i32
    return %arg0, %c0_i32 : i32, i32
  }
  func.func @transform_1(%arg0: i32, %arg1: i32) -> (i32, i32) {
    %c0_i32 = arith.constant 0 : i32
    %c0_i32_0 = arith.constant 0 : i32
    %c0_i32_1 = arith.constant 0 : i32
    return %c0_i32, %c0_i32_0 : i32, i32
  }
  func.func @transform_2(%arg0: i32, %arg1: i32) -> (i32, i32) {
    %c0_i32 = arith.constant 0 : i32
    %c0_i32_0 = arith.constant 0 : i32
    %c0_i32_1 = arith.constant 0 : i32
    return %c0_i32, %c0_i32_0 : i32, i32
  }
  func.func @transform_3(%arg0: i32, %arg1: i32) -> (i32, i32) {
    %c0_i32 = arith.constant 0 : i32
    %c0_i32_0 = arith.constant 0 : i32
    return %c0_i32, %arg1 : i32, i32
  }
  func.func @transform_4(%arg0: i32, %arg1: i32) -> (i32, i32) {
    %c0_i32 = arith.constant 0 : i32
    %c0_i32_0 = arith.constant 0 : i32
    return %c0_i32, %arg1 : i32, i32
  }
  func.func @transform_5(%arg0: i32, %arg1: i32) -> (i32, i32) {
    %c0_i32 = arith.constant 0 : i32
    return %arg0, %arg1 : i32, i32
  }
}

module attributes {stable_mosaic.version = 11 : i64} {
  func.func @_metric_head_kernel(%arg0: i32, %arg1: i32, %arg2: memref<8x256xf32, #tpu.memory_space<vmem>>, %arg3: memref<1x256xf32, #tpu.memory_space<vmem>>, %arg4: memref<1x256xf32, #tpu.memory_space<vmem>>, %arg5: memref<256x128xbf16, #tpu.memory_space<vmem>>, %arg6: memref<1x128xf32, #tpu.memory_space<vmem>>, %arg7: memref<8x128xf32, #tpu.memory_space<vmem>>, %arg8: memref<8x256xbf16, #tpu.memory_space<vmem>>) attributes {dimension_semantics = [#tpu.dimension_semantics<parallel>, #tpu.dimension_semantics<arbitrary>], iteration_bounds = array<i64: 2, 1>, scalar_prefetch = 0 : i64, scratch_operands = 1 : i64, tpu.core_type = #tpu.core_type<tc>, window_params = [{transform_indices = @transform_0, window_bounds = array<i64: 8, 256>}, {pipeline_mode = #tpu.pipeline_mode<synchronous>, transform_indices = @transform_1, window_bounds = array<i64: 1, 256>}, {pipeline_mode = #tpu.pipeline_mode<synchronous>, transform_indices = @transform_2, window_bounds = array<i64: 1, 256>}, {transform_indices = @transform_3, window_bounds = array<i64: 256, 128>}, {transform_indices = @transform_4, window_bounds = array<i64: 1, 128>}, {transform_indices = @transform_5, window_bounds = array<i64: 8, 128>}]} {
    %c0_i32 = arith.constant 0 : i32
    %0 = arith.cmpi eq, %arg1, %c0_i32 : i32
    %1 = arith.extui %0 : i1 to i32
    %c0_i32_0 = arith.constant 0 : i32
    %2 = arith.cmpi ne, %1, %c0_i32_0 : i32
    scf.if %2 {
      %c0_8 = arith.constant 0 : index
      %c0_9 = arith.constant 0 : index
      %10 = vector.load %arg2[%c0_8, %c0_9] : memref<8x256xf32, #tpu.memory_space<vmem>>, vector<8x256xf32>
      %cst_10 = arith.constant dense<0.000000e+00> : vector<8xf32>
      %11 = vector.multi_reduction <add>, %10, %cst_10 [1] : vector<8x256xf32> to vector<8xf32>
      %12 = vector.shape_cast %11 : vector<8xf32> to vector<8x1xf32>
      %cst_11 = arith.constant 2.560000e+02 : f32
      %13 = vector.broadcast %cst_11 : f32 to vector<8x1xf32>
      %14 = arith.divf %12, %13 : vector<8x1xf32>
      %15 = vector.broadcast %14 : vector<8x1xf32> to vector<8x256xf32>
      %16 = arith.subf %10, %15 : vector<8x256xf32>
      %17 = arith.mulf %16, %16 : vector<8x256xf32>
      %cst_12 = arith.constant dense<0.000000e+00> : vector<8xf32>
      %18 = vector.multi_reduction <add>, %17, %cst_12 [1] : vector<8x256xf32> to vector<8xf32>
      %19 = vector.shape_cast %18 : vector<8xf32> to vector<8x1xf32>
      %cst_13 = arith.constant 2.560000e+02 : f32
      %20 = vector.broadcast %cst_13 : f32 to vector<8x1xf32>
      %21 = arith.divf %19, %20 : vector<8x1xf32>
      %cst_14 = arith.constant 9.99999974E-6 : f32
      %22 = vector.broadcast %cst_14 : f32 to vector<8x1xf32>
      %23 = arith.addf %21, %22 : vector<8x1xf32>
      %24 = math.rsqrt %23 : vector<8x1xf32>
      %25 = vector.broadcast %24 : vector<8x1xf32> to vector<8x256xf32>
      %26 = arith.mulf %16, %25 : vector<8x256xf32>
      %c0_15 = arith.constant 0 : index
      %c0_16 = arith.constant 0 : index
      %27 = vector.load %arg3[%c0_15, %c0_16] : memref<1x256xf32, #tpu.memory_space<vmem>>, vector<1x256xf32>
      %28 = vector.broadcast %27 : vector<1x256xf32> to vector<8x256xf32>
      %29 = arith.mulf %26, %28 : vector<8x256xf32>
      %c0_17 = arith.constant 0 : index
      %c0_18 = arith.constant 0 : index
      %30 = vector.load %arg4[%c0_17, %c0_18] : memref<1x256xf32, #tpu.memory_space<vmem>>, vector<1x256xf32>
      %31 = vector.broadcast %30 : vector<1x256xf32> to vector<8x256xf32>
      %32 = arith.addf %29, %31 : vector<8x256xf32>
      %33 = arith.truncf %32 : vector<8x256xf32> to vector<8x256xbf16>
      %c0_19 = arith.constant 0 : index
      %c0_20 = arith.constant 0 : index
      %34 = vector.load %arg8[%c0_19, %c0_20] : memref<8x256xbf16, #tpu.memory_space<vmem>>, vector<8x256xbf16>
      tpu.vector_store %arg8[%c0_19, %c0_20], %33 {strides = array<i32>} : memref<8x256xbf16, #tpu.memory_space<vmem>>, vector<8x256xbf16>,
    } else {
    }
    %c0 = arith.constant 0 : index
    %c0_1 = arith.constant 0 : index
    %3 = vector.load %arg8[%c0, %c0_1] : memref<8x256xbf16, #tpu.memory_space<vmem>>, vector<8x256xbf16>
    %c0_2 = arith.constant 0 : index
    %c0_3 = arith.constant 0 : index
    %4 = vector.load %arg5[%c0_2, %c0_3] : memref<256x128xbf16, #tpu.memory_space<vmem>>, vector<256x128xbf16>
    %cst = arith.constant dense<0.000000e+00> : vector<8x128xf32>
    %5 = tpu.matmul %3, %4, %cst {dimension_numbers = #tpu.dot_dimension_numbers<[1], [0], [0], [1], [0, 0, 1, 1], [], []>} : vector<8x256xbf16>, vector<256x128xbf16>, vector<8x128xf32> -> vector<8x128xf32>
    %c0_4 = arith.constant 0 : index
    %c0_5 = arith.constant 0 : index
    %6 = vector.load %arg6[%c0_4, %c0_5] : memref<1x128xf32, #tpu.memory_space<vmem>>, vector<1x128xf32>
    %7 = vector.broadcast %6 : vector<1x128xf32> to vector<8x128xf32>
    %8 = arith.addf %5, %7 : vector<8x128xf32>
    %c0_6 = arith.constant 0 : index
    %c0_7 = arith.constant 0 : index
    %9 = vector.load %arg7[%c0_6, %c0_7] : memref<8x128xf32, #tpu.memory_space<vmem>>, vector<8x128xf32>
    tpu.vector_store %arg7[%c0_6, %c0_7], %8 {strides = array<i32>} : memref<8x128xf32, #tpu.memory_space<vmem>>, vector<8x128xf32>,
    return
  }
  func.func @transform_0(%arg0: i32, %arg1: i32) -> (i32, i32) {
    %c0_i32 = arith.constant 0 : i32
    %c0_i32_0 = arith.constant 0 : i32
    return %arg0, %c0_i32 : i32, i32
  }
  func.func @transform_1(%arg0: i32, %arg1: i32) -> (i32, i32) {
    %c0_i32 = arith.constant 0 : i32
    %c0_i32_0 = arith.constant 0 : i32
    %c0_i32_1 = arith.constant 0 : i32
    return %c0_i32, %c0_i32_0 : i32, i32
  }
  func.func @transform_2(%arg0: i32, %arg1: i32) -> (i32, i32) {
    %c0_i32 = arith.constant 0 : i32
    %c0_i32_0 = arith.constant 0 : i32
    %c0_i32_1 = arith.constant 0 : i32
    return %c0_i32, %c0_i32_0 : i32, i32
  }
  func.func @transform_3(%arg0: i32, %arg1: i32) -> (i32, i32) {
    %c0_i32 = arith.constant 0 : i32
    %c0_i32_0 = arith.constant 0 : i32
    return %c0_i32, %arg1 : i32, i32
  }
  func.func @transform_4(%arg0: i32, %arg1: i32) -> (i32, i32) {
    %c0_i32 = arith.constant 0 : i32
    %c0_i32_0 = arith.constant 0 : i32
    return %c0_i32, %arg1 : i32, i32
  }
  func.func @transform_5(%arg0: i32, %arg1: i32) -> (i32, i32) {
    %c0_i32 = arith.constant 0 : i32
    return %arg0, %arg1 : i32, i32
  }
}

</mosaic_0001>

<bundles_post_ra>
// kernel: tpu_custom_call.1
= control target key start
LH: loop header
LB: loop body
LE: loop exit
PB: predicated region body
PF: predicated region fallthrough
CT: control target
= control target key end

     0   :  { %10 = vsyncpa [#allocation4], 0  ;;  %s1024_s0 = inlined_call_operand.vmem [shape: f32[16,256], index: 0, kind: input, shape index: {}]   ;;  %s1025_s1 = inlined_call_operand.vmem [shape: f32[1,256], index: 1, kind: input, shape index: {}]   ;;  %s1026_s2 = inlined_call_operand.vmem [shape: f32[1,256], index: 2, kind: input, shape index: {}]   ;;  %s1027_s3 = inlined_call_operand.vmem [shape: bf16[256,100], index: 3, kind: input, shape index: {}]   ;;  %s1028_s4 = inlined_call_operand.vmem [shape: f32[1,100], index: 4, kind: input, shape index: {}]   ;;  %s1029_s5 = inlined_call_operand.hbm [shape: f32[16,100], index: 5, kind: output, shape index: {}]  }
   0x1   :  { %12 = vsyncpa [#allocation4 + $0x1], 0  ;;  %s870_s18 = smov 0   ;;  %s872_s19 = smov 0  }
   0x2   :  { %s874_s20 = smov 0   ;;  %s876_s21 = smov 0  }
   0x3   :  { %s878_s22 = smov 0   ;;  %s880_s23 = smov 0  }
   0x4 LB: > { %s603_s24 = sadd.s32 4294967295, %s837_s23   ;;  %s604_s25 = sadd.s32 4294967294, %s837_s23   ;;  %s837_s23 = sphi %s880_s23, %s18_s23   ;;  %s833_s22 = sphi %s878_s22, %s1036_s22   ;;  %s829_s21 = sphi %s876_s21, %s1035_s21   ;;  %s825_s20 = sphi %s874_s20, %s1034_s20   ;;  %s821_s19 = sphi %s872_s19, %s1033_s19   ;;  %s817_s18 = sphi %s870_s18, %s1032_s18  }
   0x5   : > { %s30_s26 = sadd.s32 1, %s833_s22  ;;  %s159_s27 = sadd.s32 1, %s825_s20 }
   0x6   : > { %p32_p0 = scmp.ge.s32.totalorder %s30_s26, 2  ;;  %p169_p1 = scmp.ne.s32.totalorder %s825_s20, %s821_s19 }
   0x7   : > { %p170_p2 = scmp.eq.s32.totalorder %s603_s24, 1  ;;  %p175_p3 = scmp.ne.s32.totalorder %s821_s19, %s817_s18 }
   0x8   : > { %s1038_s26 = smov (%p32_p0, %s30_s26), 0  ;;  %p176_p5 = scmp.eq.s32.totalorder %s604_s25, 1 }
   0x9   : > { %p910_p4 = por %p170_p2, %p169_p1  ;;  %s154_s29 = ssub.s32 %s833_s22, %s1038_s26 }
   0xa   : > { %p609_p6 = scmp.ge.s32.totalorder %s837_s23, 1  ;;  %p157_p7 = scmp.eq.s32.totalorder %s154_s29, 0 }
   0xb   : > { %p917_p8 = por %p176_p5, %p175_p3  ;;  %p221_p9 = scmp.lt.s32.totalorder %s837_s23, 3 }
   0xc   : > { %s923_s6 = scalar_select %p157_p7, %s825_s20, %s159_s27  }
   0xd   : > { %p222_p10 = pnand %p609_p6, %p221_p9 }
   0xe   : > { %p256_p11 = scmp.lt.s32.totalorder (!%p222_p10), %s829_s21, 1  ;;  %s253_s24 = sand.u32 (!%p222_p10), 1, %s821_s19  }
   0xf   : > { %225 = sbr.rel (%p222_p10) target bundleno = 435 (0x1b3), region = 40  ;;  %s610_s25 = sshll.u32 (!%p222_p10), %s253_s24, 3 }
  0x10   : > { %s678_s27 = sshll.u32 (!%p222_p10), %s829_s21, 3 }
  0x11   : > { %s503_s10 = scalar_lea.hbm (!%p222_p10), %s1029_s5, %s678_s27  ;;  %s779_s27 = scalar_lea.hbm (!%p222_p10), %s1029_s5, 16 }
  0x12   : > { %s507_s13 = sshll.u32 (!%p222_p10), %s503_s10, 4  ;;  %s508_s13 = int_to_ptr.hbm [resolvable:$true] %s507_s13 }
  0x13   : > { %s773_s14 = sshra.s32 (!%p222_p10), %s508_s13, 4  ;;  %s774_s14 = int_to_ptr.hbm [resolvable:$true] %s773_s14 }
  0x14   : > { %s257_s7 = scalar_select %p256_p11, %s829_s21, 1  ;;  %v839_v3 = vmov 256.0   ;;  %v689_v17 = vld [vmem:[%s1027_s3 + $0x38] sm:$0xff]  ;;  %v688_v19 = vld [vmem:[%s1027_s3 + $0x30] sm:$0xff]  ;;  %v687_v21 = vld [vmem:[%s1027_s3 + $0x28] sm:$0xff] }
  0x15   : > { %755 = vrcp.f32 %v839_v3  ;;  %v697_v18 = vld [vmem:[%s1027_s3 + $0x78] sm:$0xff]  ;;  %464 = vmatpush.bf16.msra.mxu0 %v689_v17  ;;  %v696_v20 = vld [vmem:[%s1027_s3 + $0x70] sm:$0xff]  ;;  %v695_v22 = vld [vmem:[%s1027_s3 + $0x68] sm:$0xff]  ;;  %s492_s21 = scalar_lea.sflag [#allocation4], %s253_s24  ;;  %s775_s15 = scalar_lea.hbm %s774_s14, 8 }
  0x16   : > { %s681_s8 = sshll.u32 %s257_s7, 4  ;;  %477 = vmatpush.bf16.msra.mxu1 %v697_v18  ;;  %v686_v23 = vld [vmem:[%s1027_s3 + $0x20] sm:$0xff]  ;;  %v685_v25 = vld [vmem:[%s1027_s3 + $0x18] sm:$0xff]  ;;  %v684_v27 = vld [vmem:[%s1027_s3 + $0x10] sm:$0xff]  ;;  %p776_p12 = scmp.ne.s32.totalorder %s774_s14, %s775_s15 }
  0x17   : > { %s260_s11 = scalar_lea.vmem %s1024_s0, %s681_s8  ;;  %v694_v24 = vld [vmem:[%s1027_s3 + $0x60] sm:$0xff]  ;;  %v693_v26 = vld [vmem:[%s1027_s3 + $0x58] sm:$0xff]  ;;  %v692_v28 = vld [vmem:[%s1027_s3 + $0x50] sm:$0xff]  ;;  %p780_p1 = scmp.lt.s32.totalorder %s774_s14, %s1029_s5 }
  0x18   : > { %v272_v0 = vld [vmem:[%s260_s11] sm:$0xff]  ;;  %v273_v1 = vld [vmem:[%s260_s11 + $0x8] sm:$0xff]  ;;  %s255_s11 = scalar_lea.vmem [#allocation3], %s610_s25  ;;  %p777_p13 = pnand %p776_p12, %p910_p4 }
  0x19   : > { %v274_v2 = vadd.f32 %v273_v1, %v272_v0  ;;  %465 = vmatpush.bf16.msra.mxu0 %v688_v19  ;;  %v683_v29 = vld [vmem:[%s1027_s3 + $0x8] sm:$0xff]  ;;  %v682_v31 = vld [vmem:[%s1027_s3] sm:$0xff]  ;;  %s505_s12 = sshll.u32 %s255_s11, 4  ;;  %p781_p2 = scmp.lt.s32.totalorder %s779_s27, %s775_s15  ;;  %s506_s12 = int_to_ptr.vmem [resolvable:$true] %s505_s12 }
  0x1a   : > { %478 = vmatpush.bf16.msra.mxu1 %v696_v20  ;;  %v691_v30 = vld [vmem:[%s1027_s3 + $0x48] sm:$0xff]  ;;  %v690_v32 = vld [vmem:[%s1027_s3 + $0x40] sm:$0xff]  ;;  %p778_p0 = pneg %p777_p13 }
  0x1b   : > { %275 = vadd.xlane.f32.xlu0 %v274_v2  ;;  %v756_v4 = vpop.eup %755  ;;  %v306_v41 = vld [vmem:[%s1025_s1] sm:$0x3]  ;;  %p782_p3 = por %p781_p2, %p780_p1 }
  0x1c   : > { %v278_v5 = vmul.f32 256.0, %v756_v4  ;;  %vm282_vm0 = vweird.f32 %v756_v4  ;;  %v314_v43 = vld [vmem:[%s1026_s2] sm:$0x3]  ;;  %v308_v44 = vperm.slane %v306_v41, 0  ;;  %v309_v45 = vperm.slane %v306_v41, 1 }
  0x1d   : > { %466 = vmatpush.bf16.msra.mxu0 %v687_v21  ;;  %v316_v49 = vperm.slane %v314_v43, 0  ;;  %v317_v50 = vperm.slane %v314_v43, 1  ;;  %v754_v60 = vld [vmem:[%s1028_s4] ss:$0 sm:$0xff]  ;;  %p783_p5 = pnand %p782_p3, %p778_p0 }
  0x1e   : > { %v279_v6 = vsub.f32 1.0, %v278_v5  ;;  %479 = vmatpush.bf16.msra.mxu1 %v695_v22 }
  0x20   : > { %v280_v7 = vmul.f32 %v756_v4, %v279_v6 }
  0x21   : > { %467 = vmatpush.bf16.msra.mxu0 %v686_v23 }
  0x22   : > { %v281_v8 = vadd.f32 %v756_v4, %v280_v7  ;;  %480 = vmatpush.bf16.msra.mxu1 %v694_v24 }
  0x24   : > { %v283_v9 = vsel %vm282_vm0, %v756_v4, %v281_v8 }
  0x25   : > { %468 = vmatpush.bf16.msra.mxu0 %v685_v25 }
  0x26   : > { %481 = vmatpush.bf16.msra.mxu1 %v693_v26 }
  0x29   : > { %469 = vmatpush.bf16.msra.mxu0 %v684_v27 }
  0x2a   : > { %482 = vmatpush.bf16.msra.mxu1 %v692_v28 }
  0x2d   : > { %470 = vmatpush.bf16.msra.mxu0 %v683_v29 }
  0x2e   : > { %483 = vmatpush.bf16.msra.mxu1 %v691_v30 }
  0x31   : > { %471 = vmatpush.bf16.msra.mxu0 %v682_v31 }
  0x32   : > { %484 = vmatpush.bf16.msra.mxu1 %v690_v32 }
  0x8e   : > { %v276_v10 = vpop.xlane.xlu0 %275 }
  0x8f   : > { %v284_v11 = vmul.f32 %v283_v9, %v276_v10 }
  0x91   : > { %v285_v12 = vsub.f32 %v272_v0, %v284_v11  ;;  %v286_v13 = vsub.f32 %v273_v1, %v284_v11 }
  0x93   : > { %v287_v14 = vmul.f32 %v285_v12, %v285_v12  ;;  %v288_v15 = vmul.f32 %v286_v13, %v286_v13 }
  0x95   : > { %v289_v16 = vadd.f32 %v288_v15, %v287_v14 }
  0x97   : > { %290 = vadd.xlane.f32.xlu0 %v289_v16 }
 0x10a   : > { %v291_v33 = vpop.xlane.xlu0 %290 }
 0x10b   : > { %v292_v34 = vmul.f32 %v291_v33, %v283_v9 }
 0x10d   : > { %v293_v35 = vadd.f32 1e-05, %v292_v34 }
 0x10f   : > { %757 = vrsqrt.f32 %v293_v35  ;;  %vm300_vm2 = vweird.f32 %v293_v35 }
 0x115   : > { %v758_v36 = vpop.eup %757 }
 0x116   : > { %v295_v37 = vmul.f32 %v758_v36, %v293_v35  ;;  %vm301_vm1 = vweird.f32 %v758_v36 }
 0x117   : > { %vm302_vm3 = vmor %vm300_vm2, %vm301_vm1 }
 0x118   : > { %v296_v38 = vmul.f32 %v758_v36, %v295_v37 }
 0x11a   : > { %v297_v39 = vmul.f32 0.5, %v296_v38 }
 0x11c   : > { %v298_v40 = vsub.f32 1.5, %v297_v39 }
 0x11e   : > { %v299_v42 = vmul.f32 %v758_v36, %v298_v40 }
 0x120   : > { %v303_v46 = vsel %vm302_vm3, %v758_v36, %v299_v42 }
 0x121   : > { %v304_v47 = vmul.f32 %v303_v46, %v285_v12  ;;  %v305_v48 = vmul.f32 %v303_v46, %v286_v13 }
 0x123   : > { %v312_v51 = vmul.f32 %v308_v44, %v304_v47  ;;  %v313_v52 = vmul.f32 %v309_v45, %v305_v48 }
 0x125   : > { %v320_v53 = vadd.f32 %v316_v49, %v312_v51  ;;  %v321_v54 = vadd.f32 %v317_v50, %v313_v52 }
 0x127   : > { %v322_v55 = vpack.c.bf16 %v321_v54, %v320_v53 }
 0x129   : > { %v362_v56 = vunpack.c.l.b16 %v322_v55  ;;  %v363_v57 = vunpack.c.h.b16 %v322_v55 }
 0x12b   : > { %v364_v58 = vpack.c.b16 %v362_v56, %v362_v56  ;;  %v365_v59 = vpack.c.b16 %v363_v57, %v363_v57 }
 0x12d   : > { %472 = vmatmul.bf16.vlgmr.msra.gmra.mxu0 %v364_v58  ;;  %485 = vmatmul.bf16.vlgmr.msra.gmra.mxu1 %v365_v59 }
 0x1aa   : > { %v473_v61 = vpop.f32.mrf.mxu0  ;;  %v486_v62 = vpop.f32.mrf.mxu1 }
 0x1ab   : > { %v474_v63 = vadd.f32 %v754_v60, %v473_v61 }
 0x1ad   : > { %v487_v0 = vadd.f32 %v486_v62, %v474_v63 }
 0x1af   : > { %490 = vst [vmem:[%s255_s11] sm:$0xff] %v487_v0 }
 0x1b0   : > { %786 = shalt.err (!%p783_p5)
}
 0x1b1   : > { %698 = dma.vmem_to_hbm [thread:$0]  (%p910_p4), %s506_s12, 128, %s508_s13, %s492_s21  }
 0x1b2   : > { %v475_v1 = vpop.f32.mrf.mxu0  ;;  %v488_v2 = vpop.f32.mrf.mxu1 }
 0x1b3 PF: > { %p704_p6 = scmp.ge.s32.totalorder %s837_s23, 2  ;;  %s519_s24 = sand.u32 1, %s817_s18  }
 0x1b4   : > { %s520_s7 = scalar_lea.sflag [#allocation4], %s519_s24 }
 0x1b5   : > { %p701_p7 = pnand %p704_p6, %p917_p8 }
 0x1b7   : > { %p702_p9 = pneg %p701_p7 }
 0x1b9   : > { %812 = dma.done.wait (%p702_p9), %s520_s7, 128  }
 0x1ba   : > { %814 = vsyncadd (%p702_p9), %s520_s7, 4294967168  ;;  %s18_s23 = sadd.s32 1, %s837_s23   ;;  %s1032_s18 = smov %s821_s19 }
 0x1bb   : > { %p15_p10 = scmp.ge.s32.totalorder %s18_s23, 4   ;;  %s1033_s19 = smov %s825_s20 }
 0x1bc   : > { %s1034_s20 = smov %s923_s6  ;;  %s1035_s21 = smov %s833_s22 }
 0x1bd   : > { %s1036_s22 = smov %s1038_s26  ;;  %17 = sbr.rel (!%p15_p10) target bundleno = 4 (0x4), region = 85 }
 0x1c2   :  { %526 = vsyncpa [#allocation4], 1 }
 0x1c3   :  { %528 = vsyncpa [#allocation4 + $0x1], 1 }

// kernel: tpu_custom_call.1
= control target key start
LH: loop header
LB: loop body
LE: loop exit
PB: predicated region body
PF: predicated region fallthrough
CT: control target
= control target key end

     0   :  { %10 = vsyncpa [#allocation4], 0  ;;  %s1024_s0 = inlined_call_operand.vmem [shape: f32[16,256], index: 0, kind: input, shape index: {}]   ;;  %s1025_s1 = inlined_call_operand.vmem [shape: f32[1,256], index: 1, kind: input, shape index: {}]   ;;  %s1026_s2 = inlined_call_operand.vmem [shape: f32[1,256], index: 2, kind: input, shape index: {}]   ;;  %s1027_s3 = inlined_call_operand.vmem [shape: bf16[256,100], index: 3, kind: input, shape index: {}]   ;;  %s1028_s4 = inlined_call_operand.vmem [shape: f32[1,100], index: 4, kind: input, shape index: {}]   ;;  %s1029_s5 = inlined_call_operand.hbm [shape: f32[16,100], index: 5, kind: output, shape index: {}]  }
   0x1   :  { %12 = vsyncpa [#allocation4 + $0x1], 0  ;;  %s870_s18 = smov 0   ;;  %s872_s19 = smov 0  }
   0x2   :  { %s874_s20 = smov 0   ;;  %s876_s21 = smov 0  }
   0x3   :  { %s878_s22 = smov 0   ;;  %s880_s23 = smov 0  }
   0x4 LB: > { %s603_s24 = sadd.s32 4294967295, %s837_s23   ;;  %s604_s25 = sadd.s32 4294967294, %s837_s23   ;;  %s837_s23 = sphi %s880_s23, %s18_s23   ;;  %s833_s22 = sphi %s878_s22, %s1036_s22   ;;  %s829_s21 = sphi %s876_s21, %s1035_s21   ;;  %s825_s20 = sphi %s874_s20, %s1034_s20   ;;  %s821_s19 = sphi %s872_s19, %s1033_s19   ;;  %s817_s18 = sphi %s870_s18, %s1032_s18  }
   0x5   : > { %s30_s26 = sadd.s32 1, %s833_s22  ;;  %s159_s27 = sadd.s32 1, %s825_s20 }
   0x6   : > { %p32_p0 = scmp.ge.s32.totalorder %s30_s26, 2  ;;  %p169_p1 = scmp.ne.s32.totalorder %s825_s20, %s821_s19 }
   0x7   : > { %p170_p2 = scmp.eq.s32.totalorder %s603_s24, 1  ;;  %p175_p3 = scmp.ne.s32.totalorder %s821_s19, %s817_s18 }
   0x8   : > { %s1038_s26 = smov (%p32_p0, %s30_s26), 0  ;;  %p176_p5 = scmp.eq.s32.totalorder %s604_s25, 1 }
   0x9   : > { %p910_p4 = por %p170_p2, %p169_p1  ;;  %s154_s29 = ssub.s32 %s833_s22, %s1038_s26 }
   0xa   : > { %p609_p6 = scmp.ge.s32.totalorder %s837_s23, 1  ;;  %p157_p7 = scmp.eq.s32.totalorder %s154_s29, 0 }
   0xb   : > { %p917_p8 = por %p176_p5, %p175_p3  ;;  %p221_p9 = scmp.lt.s32.totalorder %s837_s23, 3 }
   0xc   : > { %s923_s6 = scalar_select %p157_p7, %s825_s20, %s159_s27  }
   0xd   : > { %p222_p10 = pnand %p609_p6, %p221_p9 }
   0xe   : > { %p256_p11 = scmp.lt.s32.totalorder (!%p222_p10), %s829_s21, 1  ;;  %s253_s24 = sand.u32 (!%p222_p10), 1, %s821_s19  }
   0xf   : > { %225 = sbr.rel (%p222_p10) target bundleno = 435 (0x1b3), region = 40  ;;  %s610_s25 = sshll.u32 (!%p222_p10), %s253_s24, 3 }
  0x10   : > { %s678_s27 = sshll.u32 (!%p222_p10), %s829_s21, 3 }
  0x11   : > { %s503_s10 = scalar_lea.hbm (!%p222_p10), %s1029_s5, %s678_s27  ;;  %s779_s27 = scalar_lea.hbm (!%p222_p10), %s1029_s5, 16 }
  0x12   : > { %s507_s13 = sshll.u32 (!%p222_p10), %s503_s10, 4  ;;  %s508_s13 = int_to_ptr.hbm [resolvable:$true] %s507_s13 }
  0x13   : > { %s773_s14 = sshra.s32 (!%p222_p10), %s508_s13, 4  ;;  %s774_s14 = int_to_ptr.hbm [resolvable:$true] %s773_s14 }
  0x14   : > { %s257_s7 = scalar_select %p256_p11, %s829_s21, 1  ;;  %v839_v3 = vmov 256.0   ;;  %v689_v17 = vld [vmem:[%s1027_s3 + $0x38] sm:$0xff]  ;;  %v688_v19 = vld [vmem:[%s1027_s3 + $0x30] sm:$0xff]  ;;  %v687_v21 = vld [vmem:[%s1027_s3 + $0x28] sm:$0xff] }
  0x15   : > { %755 = vrcp.f32 %v839_v3  ;;  %v697_v18 = vld [vmem:[%s1027_s3 + $0x78] sm:$0xff]  ;;  %464 = vmatpush.bf16.msra.mxu0 %v689_v17  ;;  %v696_v20 = vld [vmem:[%s1027_s3 + $0x70] sm:$0xff]  ;;  %v695_v22 = vld [vmem:[%s1027_s3 + $0x68] sm:$0xff]  ;;  %s492_s21 = scalar_lea.sflag [#allocation4], %s253_s24  ;;  %s775_s15 = scalar_lea.hbm %s774_s14, 8 }
  0x16   : > { %s681_s8 = sshll.u32 %s257_s7, 4  ;;  %477 = vmatpush.bf16.msra.mxu1 %v697_v18  ;;  %v686_v23 = vld [vmem:[%s1027_s3 + $0x20] sm:$0xff]  ;;  %v685_v25 = vld [vmem:[%s1027_s3 + $0x18] sm:$0xff]  ;;  %v684_v27 = vld [vmem:[%s1027_s3 + $0x10] sm:$0xff]  ;;  %p776_p12 = scmp.ne.s32.totalorder %s774_s14, %s775_s15 }
  0x17   : > { %s260_s11 = scalar_lea.vmem %s1024_s0, %s681_s8  ;;  %v694_v24 = vld [vmem:[%s1027_s3 + $0x60] sm:$0xff]  ;;  %v693_v26 = vld [vmem:[%s1027_s3 + $0x58] sm:$0xff]  ;;  %v692_v28 = vld [vmem:[%s1027_s3 + $0x50] sm:$0xff]  ;;  %p780_p1 = scmp.lt.s32.totalorder %s774_s14, %s1029_s5 }
  0x18   : > { %v272_v0 = vld [vmem:[%s260_s11] sm:$0xff]  ;;  %v273_v1 = vld [vmem:[%s260_s11 + $0x8] sm:$0xff]  ;;  %s255_s11 = scalar_lea.vmem [#allocation3], %s610_s25  ;;  %p777_p13 = pnand %p776_p12, %p910_p4 }
  0x19   : > { %v274_v2 = vadd.f32 %v273_v1, %v272_v0  ;;  %465 = vmatpush.bf16.msra.mxu0 %v688_v19  ;;  %v683_v29 = vld [vmem:[%s1027_s3 + $0x8] sm:$0xff]  ;;  %v682_v31 = vld [vmem:[%s1027_s3] sm:$0xff]  ;;  %s505_s12 = sshll.u32 %s255_s11, 4  ;;  %p781_p2 = scmp.lt.s32.totalorder %s779_s27, %s775_s15  ;;  %s506_s12 = int_to_ptr.vmem [resolvable:$true] %s505_s12 }
  0x1a   : > { %478 = vmatpush.bf16.msra.mxu1 %v696_v20  ;;  %v691_v30 = vld [vmem:[%s1027_s3 + $0x48] sm:$0xff]  ;;  %v690_v32 = vld [vmem:[%s1027_s3 + $0x40] sm:$0xff]  ;;  %p778_p0 = pneg %p777_p13 }
  0x1b   : > { %275 = vadd.xlane.f32.xlu0 %v274_v2  ;;  %v756_v4 = vpop.eup %755  ;;  %v306_v41 = vld [vmem:[%s1025_s1] sm:$0x3]  ;;  %p782_p3 = por %p781_p2, %p780_p1 }
  0x1c   : > { %v278_v5 = vmul.f32 256.0, %v756_v4  ;;  %vm282_vm0 = vweird.f32 %v756_v4  ;;  %v314_v43 = vld [vmem:[%s1026_s2] sm:$0x3]  ;;  %v308_v44 = vperm.slane %v306_v41, 0  ;;  %v309_v45 = vperm.slane %v306_v41, 1 }
  0x1d   : > { %466 = vmatpush.bf16.msra.mxu0 %v687_v21  ;;  %v316_v49 = vperm.slane %v314_v43, 0  ;;  %v317_v50 = vperm.slane %v314_v43, 1  ;;  %v754_v60 = vld [vmem:[%s1028_s4] ss:$0 sm:$0xff]  ;;  %p783_p5 = pnand %p782_p3, %p778_p0 }
  0x1e   : > { %v279_v6 = vsub.f32 1.0, %v278_v5  ;;  %479 = vmatpush.bf16.msra.mxu1 %v695_v22 }
  0x20   : > { %v280_v7 = vmul.f32 %v756_v4, %v279_v6 }
  0x21   : > { %467 = vmatpush.bf16.msra.mxu0 %v686_v23 }
  0x22   : > { %v281_v8 = vadd.f32 %v756_v4, %v280_v7  ;;  %480 = vmatpush.bf16.msra.mxu1 %v694_v24 }
  0x24   : > { %v283_v9 = vsel %vm282_vm0, %v756_v4, %v281_v8 }
  0x25   : > { %468 = vmatpush.bf16.msra.mxu0 %v685_v25 }
  0x26   : > { %481 = vmatpush.bf16.msra.mxu1 %v693_v26 }
  0x29   : > { %469 = vmatpush.bf16.msra.mxu0 %v684_v27 }
  0x2a   : > { %482 = vmatpush.bf16.msra.mxu1 %v692_v28 }
  0x2d   : > { %470 = vmatpush.bf16.msra.mxu0 %v683_v29 }
  0x2e   : > { %483 = vmatpush.bf16.msra.mxu1 %v691_v30 }
  0x31   : > { %471 = vmatpush.bf16.msra.mxu0 %v682_v31 }
  0x32   : > { %484 = vmatpush.bf16.msra.mxu1 %v690_v32 }
  0x8e   : > { %v276_v10 = vpop.xlane.xlu0 %275 }
  0x8f   : > { %v284_v11 = vmul.f32 %v283_v9, %v276_v10 }
  0x91   : > { %v285_v12 = vsub.f32 %v272_v0, %v284_v11  ;;  %v286_v13 = vsub.f32 %v273_v1, %v284_v11 }
  0x93   : > { %v287_v14 = vmul.f32 %v285_v12, %v285_v12  ;;  %v288_v15 = vmul.f32 %v286_v13, %v286_v13 }
  0x95   : > { %v289_v16 = vadd.f32 %v288_v15, %v287_v14 }
  0x97   : > { %290 = vadd.xlane.f32.xlu0 %v289_v16 }
 0x10a   : > { %v291_v33 = vpop.xlane.xlu0 %290 }
 0x10b   : > { %v292_v34 = vmul.f32 %v291_v33, %v283_v9 }
 0x10d   : > { %v293_v35 = vadd.f32 1e-05, %v292_v34 }
 0x10f   : > { %757 = vrsqrt.f32 %v293_v35  ;;  %vm300_vm2 = vweird.f32 %v293_v35 }
 0x115   : > { %v758_v36 = vpop.eup %757 }
 0x116   : > { %v295_v37 = vmul.f32 %v758_v36, %v293_v35  ;;  %vm301_vm1 = vweird.f32 %v758_v36 }
 0x117   : > { %vm302_vm3 = vmor %vm300_vm2, %vm301_vm1 }
 0x118   : > { %v296_v38 = vmul.f32 %v758_v36, %v295_v37 }
 0x11a   : > { %v297_v39 = vmul.f32 0.5, %v296_v38 }
 0x11c   : > { %v298_v40 = vsub.f32 1.5, %v297_v39 }
 0x11e   : > { %v299_v42 = vmul.f32 %v758_v36, %v298_v40 }
 0x120   : > { %v303_v46 = vsel %vm302_vm3, %v758_v36, %v299_v42 }
 0x121   : > { %v304_v47 = vmul.f32 %v303_v46, %v285_v12  ;;  %v305_v48 = vmul.f32 %v303_v46, %v286_v13 }
 0x123   : > { %v312_v51 = vmul.f32 %v308_v44, %v304_v47  ;;  %v313_v52 = vmul.f32 %v309_v45, %v305_v48 }
 0x125   : > { %v320_v53 = vadd.f32 %v316_v49, %v312_v51  ;;  %v321_v54 = vadd.f32 %v317_v50, %v313_v52 }
 0x127   : > { %v322_v55 = vpack.c.bf16 %v321_v54, %v320_v53 }
 0x129   : > { %v362_v56 = vunpack.c.l.b16 %v322_v55  ;;  %v363_v57 = vunpack.c.h.b16 %v322_v55 }
 0x12b   : > { %v364_v58 = vpack.c.b16 %v362_v56, %v362_v56  ;;  %v365_v59 = vpack.c.b16 %v363_v57, %v363_v57 }
 0x12d   : > { %472 = vmatmul.bf16.vlgmr.msra.gmra.mxu0 %v364_v58  ;;  %485 = vmatmul.bf16.vlgmr.msra.gmra.mxu1 %v365_v59 }
 0x1aa   : > { %v473_v61 = vpop.f32.mrf.mxu0  ;;  %v486_v62 = vpop.f32.mrf.mxu1 }
 0x1ab   : > { %v474_v63 = vadd.f32 %v754_v60, %v473_v61 }
 0x1ad   : > { %v487_v0 = vadd.f32 %v486_v62, %v474_v63 }
 0x1af   : > { %490 = vst [vmem:[%s255_s11] sm:$0xff] %v487_v0 }
 0x1b0   : > { %786 = shalt.err (!%p783_p5)
}
 0x1b1   : > { %698 = dma.vmem_to_hbm [thread:$0]  (%p910_p4), %s506_s12, 128, %s508_s13, %s492_s21  }
 0x1b2   : > { %v475_v1 = vpop.f32.mrf.mxu0  ;;  %v488_v2 = vpop.f32.mrf.mxu1 }
 0x1b3 PF: > { %p704_p6 = scmp.ge.s32.totalorder %s837_s23, 2  ;;  %s519_s24 = sand.u32 1, %s817_s18  }
 0x1b4   : > { %s520_s7 = scalar_lea.sflag [#allocation4], %s519_s24 }
 0x1b5   : > { %p701_p7 = pnand %p704_p6, %p917_p8 }
 0x1b7   : > { %p702_p9 = pneg %p701_p7 }
 0x1b9   : > { %812 = dma.done.wait (%p702_p9), %s520_s7, 128  }
 0x1ba   : > { %814 = vsyncadd (%p702_p9), %s520_s7, 4294967168  ;;  %s18_s23 = sadd.s32 1, %s837_s23   ;;  %s1032_s18 = smov %s821_s19 }
 0x1bb   : > { %p15_p10 = scmp.ge.s32.totalorder %s18_s23, 4   ;;  %s1033_s19 = smov %s825_s20 }
 0x1bc   : > { %s1034_s20 = smov %s923_s6  ;;  %s1035_s21 = smov %s833_s22 }
 0x1bd   : > { %s1036_s22 = smov %s1038_s26  ;;  %17 = sbr.rel (!%p15_p10) target bundleno = 4 (0x4), region = 85 }
 0x1c2   :  { %526 = vsyncpa [#allocation4], 1 }
 0x1c3   :  { %528 = vsyncpa [#allocation4 + $0x1], 1 }

</bundles_post_ra>
